<compile_context>
chip_gen: v7x
topology: tpu7x:2x2x1
jax: 0.10.0
libtpu: 0.0.40
codegen_flags: <defaults>
</compile_context>

<pallas_src>
import functools

import jax
import jax.numpy as jnp
from jax.experimental import pallas as pl
from jax.experimental.pallas import tpu as pltpu


def rnn_seq_kernel(len_ref, x_ref, wh_ref, h0_ref, lp_ref, hT_ref):
    """Single invocation == whole sequence.

    len_ref : SMEM [1] int32       true (un-padded) sequence length
    x_ref   : VMEM [T_pad, H+Op]   precomputed per-step input rows (wx[idx] + bias,
                                   padded logit lanes already hold -1e30)
    wh_ref  : VMEM [H, H+Op]       fused (i2h | i2o) hidden-weight columns (resident)
    h0_ref  : VMEM [B, H]          initial hidden state
    lp_ref  : VMEM [T_pad, Op]     per-step log-probs (lane-dense, resident, 1 writeback)
    hT_ref  : VMEM [B, H]          final hidden state
    """
    H = hT_ref.shape[1]
    T_pad = x_ref.shape[0]
    n_valid = len_ref[0]
    wh = wh_ref[...]                                   # [H, H+Op], resident

    def step(t, h):
        # Single fused MXU matmul for both Linear layers (hidden + logit columns);
        # the one-hot-input matmul + bias is the precomputed row x_ref[t].
        pre = (jnp.dot(h, wh, preferred_element_type=jnp.float32)
               + x_ref[pl.ds(t, 1), :])                # [B, H+Op]

        hidden_new = pre[:, :H]                        # [B, H]
        logits = pre[:, H:]                            # [B, Op]; padded lanes ~ -1e30

        # Numerically stable LogSoftmax over the feature axis (f32 throughout).
        m = jnp.max(logits, axis=-1, keepdims=True)
        shifted = logits - m
        lse = jnp.log(jnp.sum(jnp.exp(shifted), axis=-1, keepdims=True))
        lp_ref[pl.ds(t, 1), :] = (shifted - lse).astype(lp_ref.dtype)

        # Gate the carry: padded bucket steps must not perturb the final hidden.
        return jnp.where(t < n_valid, hidden_new, h)

    h_final = jax.lax.fori_loop(0, T_pad, step, h0_ref[...], unroll=True)
    hT_ref[...] = h_final.astype(hT_ref.dtype)


def pack_weights(w_i2h, b_i2h, w_i2o, b_i2o, n_letters, o_pad=128):
    """One-time weight prep (PyTorch [out, in] layout -> fused [in, out] blocks)."""
    H = w_i2h.shape[0]
    O = w_i2o.shape[0]
    I = n_letters
    HO = H + o_pad

    wx = jnp.zeros((I, HO), jnp.float32)
    wx = wx.at[:, :H].set(w_i2h[:, :I].T)              # input cols of i2h
    wx = wx.at[:, H:H + O].set(w_i2o[:, :I].T)         # input cols of i2o

    wh = jnp.zeros((H, HO), jnp.float32)
    wh = wh.at[:, :H].set(w_i2h[:, I:].T)              # hidden cols of i2h
    wh = wh.at[:, H:H + O].set(w_i2o[:, I:].T)         # hidden cols of i2o

    b = jnp.zeros((1, HO), jnp.float32)
    b = b.at[0, :H].set(b_i2h)
    b = b.at[0, H:H + O].set(b_i2o)
    b = b.at[0, H + O:].set(-1e30)                     # mask padded logit lanes (f32!)
    return wx, wh, b


def rnn_sequence_forward(letter_idx, h0, wx, wh, b, n_categories, bucket=8):
    """Run the full character sequence in one pallas_call.

    letter_idx: [T] int32, h0: [1, H].  Returns (log_probs [T, 1, O], h_final [1, H]).
    """
    T = int(letter_idx.shape[0])
    B, H = h0.shape
    assert B == 1, "module semantics: one name (batch row) at a time"
    I, HO = wx.shape
    O_pad = HO - H

    # Bucket T so distinct name lengths within a bucket share one compiled kernel.
    T_pad = max(bucket, ((T + bucket - 1) // bucket) * bucket)
    idx_pad = jnp.zeros((T_pad,), jnp.int32).at[:T].set(letter_idx.astype(jnp.int32))

    # Precompute per-step input rows (one-hot @ Wx + bias) outside the hot path.
    x_seq = wx[idx_pad] + b                            # [T_pad, HO] f32
    seq_len = jnp.full((1,), T, jnp.int32)

    grid_spec = pltpu.PrefetchScalarGridSpec(
        num_scalar_prefetch=1,                         # seq_len -> SMEM
        grid=(1,),
        in_specs=[
            pl.BlockSpec((T_pad, HO), lambda i, n: (0, 0)),   # x_seq: resident
            pl.BlockSpec((H, HO), lambda i, n: (0, 0)),       # wh:    resident
            pl.BlockSpec((B, H), lambda i, n: (0, 0)),        # h0:    resident
        ],
        out_specs=(
            pl.BlockSpec((T_pad, O_pad), lambda i, n: (0, 0)),  # log-probs (1 writeback)
            pl.BlockSpec((B, H), lambda i, n: (0, 0)),          # final hidden
        ),
    )

    cost = pl.CostEstimate(
        flops=int(2 * T_pad * B * H * HO),
        transcendentals=int(T_pad * B * (O_pad + 1)),
        bytes_accessed=int(4 * (T_pad * HO + H * HO + 2 * B * H + T_pad * O_pad) + 4),
    )

    log_probs_pad, h_final = pl.pallas_call(
        rnn_seq_kernel,
        grid_spec=grid_spec,
        out_shape=(
            jax.ShapeDtypeStruct((T_pad, O_pad), jnp.float32),
            jax.ShapeDtypeStruct((B, H), jnp.float32),
        ),
        compiler_params=pltpu.CompilerParams(
            dimension_semantics=("arbitrary",),
        ),
        cost_estimate=cost,
    )(seq_len, x_seq, wh, h0)

    log_probs = log_probs_pad[:T, :n_categories].reshape(T, B, n_categories)
    return log_probs, h_final


def rnn_forward(letter_index, hidden, wx, wh, b, n_categories):
    """Single-step API mirroring the PyTorch module's forward(input, hidden)."""
    idx = jnp.asarray(letter_index, jnp.int32).reshape(1)
    log_probs, h_new = rnn_sequence_forward(idx, hidden, wx, wh, b, n_categories)
    return log_probs[0], h_new


def _reference_sequence(letter_idx, h0, w_i2h, b_i2h, w_i2o, b_i2o, n_letters):
    """Pure-JAX step-by-step reference (exact PyTorch-module semantics)."""
    h = h0
    lps = []
    for t in range(letter_idx.shape[0]):
        x = jnp.zeros((h0.shape[0], n_letters), jnp.float32).at[0, int(letter_idx[t])].set(1.0)
        combined = jnp.concatenate([x, h], axis=1)
        h = combined @ w_i2h.T + b_i2h
        logits = combined @ w_i2o.T + b_i2o
        lps.append(jax.nn.log_softmax(logits, axis=1))
    return jnp.stack(lps, axis=0), h


if __name__ == "__main__":
    # Sizes implied by the module: n_letters = 52 + 5 = 57, n_hidden = 128,
    # output_size = #name categories (18, the classic tutorial value).
    n_letters = 57
    n_hidden = 128
    n_categories = 18
    T = 8          # small example sequence ("name") length
    batch = 1

    key = jax.random.PRNGKey(0)
    k0, k1, k2, k3, k4 = jax.random.split(key, 5)

    fan_in = n_letters + n_hidden
    bound = 1.0 / (fan_in ** 0.5)

    # Deterministic parameter init (PyTorch Linear layout: [out, in]).
    w_i2h = jax.random.uniform(k0, (n_hidden, fan_in), jnp.float32, -bound, bound)
    b_i2h = jax.random.uniform(k1, (n_hidden,), jnp.float32, -bound, bound)
    w_i2o = jax.random.uniform(k2, (n_categories, fan_in), jnp.float32, -bound, bound)
    b_i2o = jax.random.uniform(k3, (n_categories,), jnp.float32, -bound, bound)

    # Sequence of letter indices (what letter2Tensor would one-hot encode).
    letter_idx = jax.random.randint(k4, (T,), 0, n_letters, dtype=jnp.int32)
    h0 = jnp.zeros((batch, n_hidden), jnp.float32)

    # One-time weight packing (outside the per-step / per-sequence hot path).
    wx, wh, b = pack_weights(w_i2h, b_i2h, w_i2o, b_i2o, n_letters)

    log_probs, h_final = rnn_sequence_forward(letter_idx, h0, wx, wh, b, n_categories)
    jax.block_until_ready((log_probs, h_final))

    ref_lp, ref_h = _reference_sequence(letter_idx, h0, w_i2h, b_i2h, w_i2o, b_i2o, n_letters)
    assert jnp.allclose(log_probs, ref_lp, atol=1e-4), "log_softmax sequence mismatch"
    assert jnp.allclose(h_final, ref_h, atol=1e-4), "final hidden mismatch"

    # Also exercise the single-step API (module-forward parity for one char).
    lp1, h1 = rnn_forward(letter_idx[0], h0, wx, wh, b, n_categories)
    jax.block_until_ready((lp1, h1))
    assert jnp.allclose(lp1, ref_lp[0], atol=1e-4), "single-step log_softmax mismatch"

    # TODO(synk): chip-level throughput (MXU fill, v7x dual-TC) needs batching many
    # independent names per call — a workload-level change outside the module's B=1 API.

    print("KERNEL_OK")
</pallas_src>

<mosaic_0001>
module attributes {stable_mosaic.version = 11 : i64} {
  func.func @rnn_seq_kernel(%arg0: i32, %arg1: memref<1xi32, #tpu.memory_space<smem>>, %arg2: memref<8x256xf32, #tpu.memory_space<vmem>>, %arg3: memref<128x256xf32, #tpu.memory_space<vmem>>, %arg4: memref<1x128xf32, #tpu.memory_space<vmem>>, %arg5: memref<8x128xf32, #tpu.memory_space<vmem>>, %arg6: memref<1x128xf32, #tpu.memory_space<vmem>>) attributes {dimension_semantics = [#tpu.dimension_semantics<arbitrary>], iteration_bounds = array<i64: 1>, scalar_prefetch = 1 : i64, scratch_operands = 0 : i64, tpu.core_type = #tpu.core_type<tc>, window_params = [{pipeline_mode = #tpu.pipeline_mode<synchronous>, transform_indices = @transform_0, window_bounds = array<i64: 8, 256>}, {pipeline_mode = #tpu.pipeline_mode<synchronous>, transform_indices = @transform_1, window_bounds = array<i64: 128, 256>}, {pipeline_mode = #tpu.pipeline_mode<synchronous>, transform_indices = @transform_2, window_bounds = array<i64: 1, 128>}, {pipeline_mode = #tpu.pipeline_mode<synchronous>, transform_indices = @transform_3, window_bounds = array<i64: 8, 128>}, {pipeline_mode = #tpu.pipeline_mode<synchronous>, transform_indices = @transform_4, window_bounds = array<i64: 1, 128>}]} {
    %c0 = arith.constant 0 : index
    %0 = memref.load %arg1[%c0] : memref<1xi32, #tpu.memory_space<smem>>
    %c0_0 = arith.constant 0 : index
    %c0_1 = arith.constant 0 : index
    %1 = vector.load %arg3[%c0_0, %c0_1] : memref<128x256xf32, #tpu.memory_space<vmem>>, vector<128x256xf32>
    %c0_2 = arith.constant 0 : index
    %c0_3 = arith.constant 0 : index
    %2 = vector.load %arg4[%c0_2, %c0_3] : memref<1x128xf32, #tpu.memory_space<vmem>>, vector<1x128xf32>
    %c0_i32 = arith.constant 0 : i32
    %cst = arith.constant dense<0.000000e+00> : vector<1x256xf32>
    %3 = tpu.matmul %2, %1, %cst {dimension_numbers = #tpu.dot_dimension_numbers<[1], [0], [0], [1], [0, 0, 1, 1], [], []>} : vector<1x128xf32>, vector<128x256xf32>, vector<1x256xf32> -> vector<1x256xf32>
    %4 = arith.index_cast %c0_i32 : i32 to index
    %c0_4 = arith.constant 0 : index
    %5 = vector.load %arg2[%4, %c0_4] : memref<8x256xf32, #tpu.memory_space<vmem>>, vector<1x256xf32>
    %6 = arith.addf %3, %5 : vector<1x256xf32>
    %7 = vector.extract_strided_slice %6 {offsets = [0, 0], sizes = [1, 128], strides = [1, 1]} : vector<1x256xf32> to vector<1x128xf32>
    %8 = vector.extract_strided_slice %6 {offsets = [0, 128], sizes = [1, 128], strides = [1, 1]} : vector<1x256xf32> to vector<1x128xf32>
    %cst_5 = arith.constant dense<0xFF800000> : vector<1xf32>
    %9 = vector.multi_reduction <maximumf>, %8, %cst_5 [1] : vector<1x128xf32> to vector<1xf32>
    %10 = vector.shape_cast %9 : vector<1xf32> to vector<1x1xf32>
    %11 = vector.broadcast %10 : vector<1x1xf32> to vector<1x128xf32>
    %12 = arith.subf %8, %11 : vector<1x128xf32>
    %13 = math.exp %12 : vector<1x128xf32>
    %cst_6 = arith.constant dense<0.000000e+00> : vector<1xf32>
    %14 = vector.multi_reduction <add>, %13, %cst_6 [1] : vector<1x128xf32> to vector<1xf32>
    %15 = vector.shape_cast %14 : vector<1xf32> to vector<1x1xf32>
    %16 = math.log %15 : vector<1x1xf32>
    %17 = vector.broadcast %16 : vector<1x1xf32> to vector<1x128xf32>
    %18 = arith.subf %12, %17 : vector<1x128xf32>
    %19 = arith.index_cast %c0_i32 : i32 to index
    %c0_7 = arith.constant 0 : index
    %20 = vector.load %arg5[%19, %c0_7] : memref<8x128xf32, #tpu.memory_space<vmem>>, vector<1x128xf32>
    tpu.vector_store %arg5[%19, %c0_7], %18 {strides = array<i32>} : memref<8x128xf32, #tpu.memory_space<vmem>>, vector<1x128xf32>,
    %21 = arith.cmpi slt, %c0_i32, %0 : i32
    %22 = arith.select %21, %7, %2 : vector<1x128xf32>
    %c1_i32 = arith.constant 1 : i32
    %cst_8 = arith.constant dense<0.000000e+00> : vector<1x256xf32>
    %23 = tpu.matmul %22, %1, %cst_8 {dimension_numbers = #tpu.dot_dimension_numbers<[1], [0], [0], [1], [0, 0, 1, 1], [], []>} : vector<1x128xf32>, vector<128x256xf32>, vector<1x256xf32> -> vector<1x256xf32>
    %24 = arith.index_cast %c1_i32 : i32 to index
    %c0_9 = arith.constant 0 : index
    %25 = vector.load %arg2[%24, %c0_9] : memref<8x256xf32, #tpu.memory_space<vmem>>, vector<1x256xf32>
    %26 = arith.addf %23, %25 : vector<1x256xf32>
    %27 = vector.extract_strided_slice %26 {offsets = [0, 0], sizes = [1, 128], strides = [1, 1]} : vector<1x256xf32> to vector<1x128xf32>
    %28 = vector.extract_strided_slice %26 {offsets = [0, 128], sizes = [1, 128], strides = [1, 1]} : vector<1x256xf32> to vector<1x128xf32>
    %cst_10 = arith.constant dense<0xFF800000> : vector<1xf32>
    %29 = vector.multi_reduction <maximumf>, %28, %cst_10 [1] : vector<1x128xf32> to vector<1xf32>
    %30 = vector.shape_cast %29 : vector<1xf32> to vector<1x1xf32>
    %31 = vector.broadcast %30 : vector<1x1xf32> to vector<1x128xf32>
    %32 = arith.subf %28, %31 : vector<1x128xf32>
    %33 = math.exp %32 : vector<1x128xf32>
    %cst_11 = arith.constant dense<0.000000e+00> : vector<1xf32>
    %34 = vector.multi_reduction <add>, %33, %cst_11 [1] : vector<1x128xf32> to vector<1xf32>
    %35 = vector.shape_cast %34 : vector<1xf32> to vector<1x1xf32>
    %36 = math.log %35 : vector<1x1xf32>
    %37 = vector.broadcast %36 : vector<1x1xf32> to vector<1x128xf32>
    %38 = arith.subf %32, %37 : vector<1x128xf32>
    %39 = arith.index_cast %c1_i32 : i32 to index
    %c0_12 = arith.constant 0 : index
    %40 = vector.load %arg5[%39, %c0_12] : memref<8x128xf32, #tpu.memory_space<vmem>>, vector<1x128xf32>
    tpu.vector_store %arg5[%39, %c0_12], %38 {strides = array<i32>} : memref<8x128xf32, #tpu.memory_space<vmem>>, vector<1x128xf32>,
    %41 = arith.cmpi slt, %c1_i32, %0 : i32
    %42 = arith.select %41, %27, %22 : vector<1x128xf32>
    %c2_i32 = arith.constant 2 : i32
    %cst_13 = arith.constant dense<0.000000e+00> : vector<1x256xf32>
    %43 = tpu.matmul %42, %1, %cst_13 {dimension_numbers = #tpu.dot_dimension_numbers<[1], [0], [0], [1], [0, 0, 1, 1], [], []>} : vector<1x128xf32>, vector<128x256xf32>, vector<1x256xf32> -> vector<1x256xf32>
    %44 = arith.index_cast %c2_i32 : i32 to index
    %c0_14 = arith.constant 0 : index
    %45 = vector.load %arg2[%44, %c0_14] : memref<8x256xf32, #tpu.memory_space<vmem>>, vector<1x256xf32>
    %46 = arith.addf %43, %45 : vector<1x256xf32>
    %47 = vector.extract_strided_slice %46 {offsets = [0, 0], sizes = [1, 128], strides = [1, 1]} : vector<1x256xf32> to vector<1x128xf32>
    %48 = vector.extract_strided_slice %46 {offsets = [0, 128], sizes = [1, 128], strides = [1, 1]} : vector<1x256xf32> to vector<1x128xf32>
    %cst_15 = arith.constant dense<0xFF800000> : vector<1xf32>
    %49 = vector.multi_reduction <maximumf>, %48, %cst_15 [1] : vector<1x128xf32> to vector<1xf32>
    %50 = vector.shape_cast %49 : vector<1xf32> to vector<1x1xf32>
    %51 = vector.broadcast %50 : vector<1x1xf32> to vector<1x128xf32>
    %52 = arith.subf %48, %51 : vector<1x128xf32>
    %53 = math.exp %52 : vector<1x128xf32>
    %cst_16 = arith.constant dense<0.000000e+00> : vector<1xf32>
    %54 = vector.multi_reduction <add>, %53, %cst_16 [1] : vector<1x128xf32> to vector<1xf32>
    %55 = vector.shape_cast %54 : vector<1xf32> to vector<1x1xf32>
    %56 = math.log %55 : vector<1x1xf32>
    %57 = vector.broadcast %56 : vector<1x1xf32> to vector<1x128xf32>
    %58 = arith.subf %52, %57 : vector<1x128xf32>
    %59 = arith.index_cast %c2_i32 : i32 to index
    %c0_17 = arith.constant 0 : index
    %60 = vector.load %arg5[%59, %c0_17] : memref<8x128xf32, #tpu.memory_space<vmem>>, vector<1x128xf32>
    tpu.vector_store %arg5[%59, %c0_17], %58 {strides = array<i32>} : memref<8x128xf32, #tpu.memory_space<vmem>>, vector<1x128xf32>,
    %61 = arith.cmpi slt, %c2_i32, %0 : i32
    %62 = arith.select %61, %47, %42 : vector<1x128xf32>
    %c3_i32 = arith.constant 3 : i32
    %cst_18 = arith.constant dense<0.000000e+00> : vector<1x256xf32>
    %63 = tpu.matmul %62, %1, %cst_18 {dimension_numbers = #tpu.dot_dimension_numbers<[1], [0], [0], [1], [0, 0, 1, 1], [], []>} : vector<1x128xf32>, vector<128x256xf32>, vector<1x256xf32> -> vector<1x256xf32>
    %64 = arith.index_cast %c3_i32 : i32 to index
    %c0_19 = arith.constant 0 : index
    %65 = vector.load %arg2[%64, %c0_19] : memref<8x256xf32, #tpu.memory_space<vmem>>, vector<1x256xf32>
    %66 = arith.addf %63, %65 : vector<1x256xf32>
    %67 = vector.extract_strided_slice %66 {offsets = [0, 0], sizes = [1, 128], strides = [1, 1]} : vector<1x256xf32> to vector<1x128xf32>
    %68 = vector.extract_strided_slice %66 {offsets = [0, 128], sizes = [1, 128], strides = [1, 1]} : vector<1x256xf32> to vector<1x128xf32>
    %cst_20 = arith.constant dense<0xFF800000> : vector<1xf32>
    %69 = vector.multi_reduction <maximumf>, %68, %cst_20 [1] : vector<1x128xf32> to vector<1xf32>
    %70 = vector.shape_cast %69 : vector<1xf32> to vector<1x1xf32>
    %71 = vector.broadcast %70 : vector<1x1xf32> to vector<1x128xf32>
    %72 = arith.subf %68, %71 : vector<1x128xf32>
    %73 = math.exp %72 : vector<1x128xf32>
    %cst_21 = arith.constant dense<0.000000e+00> : vector<1xf32>
    %74 = vector.multi_reduction <add>, %73, %cst_21 [1] : vector<1x128xf32> to vector<1xf32>
    %75 = vector.shape_cast %74 : vector<1xf32> to vector<1x1xf32>
    %76 = math.log %75 : vector<1x1xf32>
    %77 = vector.broadcast %76 : vector<1x1xf32> to vector<1x128xf32>
    %78 = arith.subf %72, %77 : vector<1x128xf32>
    %79 = arith.index_cast %c3_i32 : i32 to index
    %c0_22 = arith.constant 0 : index
    %80 = vector.load %arg5[%79, %c0_22] : memref<8x128xf32, #tpu.memory_space<vmem>>, vector<1x128xf32>
    tpu.vector_store %arg5[%79, %c0_22], %78 {strides = array<i32>} : memref<8x128xf32, #tpu.memory_space<vmem>>, vector<1x128xf32>,
    %81 = arith.cmpi slt, %c3_i32, %0 : i32
    %82 = arith.select %81, %67, %62 : vector<1x128xf32>
    %c4_i32 = arith.constant 4 : i32
    %cst_23 = arith.constant dense<0.000000e+00> : vector<1x256xf32>
    %83 = tpu.matmul %82, %1, %cst_23 {dimension_numbers = #tpu.dot_dimension_numbers<[1], [0], [0], [1], [0, 0, 1, 1], [], []>} : vector<1x128xf32>, vector<128x256xf32>, vector<1x256xf32> -> vector<1x256xf32>
    %84 = arith.index_cast %c4_i32 : i32 to index
    %c0_24 = arith.constant 0 : index
    %85 = vector.load %arg2[%84, %c0_24] : memref<8x256xf32, #tpu.memory_space<vmem>>, vector<1x256xf32>
    %86 = arith.addf %83, %85 : vector<1x256xf32>
    %87 = vector.extract_strided_slice %86 {offsets = [0, 0], sizes = [1, 128], strides = [1, 1]} : vector<1x256xf32> to vector<1x128xf32>
    %88 = vector.extract_strided_slice %86 {offsets = [0, 128], sizes = [1, 128], strides = [1, 1]} : vector<1x256xf32> to vector<1x128xf32>
    %cst_25 = arith.constant dense<0xFF800000> : vector<1xf32>
    %89 = vector.multi_reduction <maximumf>, %88, %cst_25 [1] : vector<1x128xf32> to vector<1xf32>
    %90 = vector.shape_cast %89 : vector<1xf32> to vector<1x1xf32>
    %91 = vector.broadcast %90 : vector<1x1xf32> to vector<1x128xf32>
    %92 = arith.subf %88, %91 : vector<1x128xf32>
    %93 = math.exp %92 : vector<1x128xf32>
    %cst_26 = arith.constant dense<0.000000e+00> : vector<1xf32>
    %94 = vector.multi_reduction <add>, %93, %cst_26 [1] : vector<1x128xf32> to vector<1xf32>
    %95 = vector.shape_cast %94 : vector<1xf32> to vector<1x1xf32>
    %96 = math.log %95 : vector<1x1xf32>
    %97 = vector.broadcast %96 : vector<1x1xf32> to vector<1x128xf32>
    %98 = arith.subf %92, %97 : vector<1x128xf32>
    %99 = arith.index_cast %c4_i32 : i32 to index
    %c0_27 = arith.constant 0 : index
    %100 = vector.load %arg5[%99, %c0_27] : memref<8x128xf32, #tpu.memory_space<vmem>>, vector<1x128xf32>
    tpu.vector_store %arg5[%99, %c0_27], %98 {strides = array<i32>} : memref<8x128xf32, #tpu.memory_space<vmem>>, vector<1x128xf32>,
    %101 = arith.cmpi slt, %c4_i32, %0 : i32
    %102 = arith.select %101, %87, %82 : vector<1x128xf32>
    %c5_i32 = arith.constant 5 : i32
    %cst_28 = arith.constant dense<0.000000e+00> : vector<1x256xf32>
    %103 = tpu.matmul %102, %1, %cst_28 {dimension_numbers = #tpu.dot_dimension_numbers<[1], [0], [0], [1], [0, 0, 1, 1], [], []>} : vector<1x128xf32>, vector<128x256xf32>, vector<1x256xf32> -> vector<1x256xf32>
    %104 = arith.index_cast %c5_i32 : i32 to index
    %c0_29 = arith.constant 0 : index
    %105 = vector.load %arg2[%104, %c0_29] : memref<8x256xf32, #tpu.memory_space<vmem>>, vector<1x256xf32>
    %106 = arith.addf %103, %105 : vector<1x256xf32>
    %107 = vector.extract_strided_slice %106 {offsets = [0, 0], sizes = [1, 128], strides = [1, 1]} : vector<1x256xf32> to vector<1x128xf32>
    %108 = vector.extract_strided_slice %106 {offsets = [0, 128], sizes = [1, 128], strides = [1, 1]} : vector<1x256xf32> to vector<1x128xf32>
    %cst_30 = arith.constant dense<0xFF800000> : vector<1xf32>
    %109 = vector.multi_reduction <maximumf>, %108, %cst_30 [1] : vector<1x128xf32> to vector<1xf32>
    %110 = vector.shape_cast %109 : vector<1xf32> to vector<1x1xf32>
    %111 = vector.broadcast %110 : vector<1x1xf32> to vector<1x128xf32>
    %112 = arith.subf %108, %111 : vector<1x128xf32>
    %113 = math.exp %112 : vector<1x128xf32>
    %cst_31 = arith.constant dense<0.000000e+00> : vector<1xf32>
    %114 = vector.multi_reduction <add>, %113, %cst_31 [1] : vector<1x128xf32> to vector<1xf32>
    %115 = vector.shape_cast %114 : vector<1xf32> to vector<1x1xf32>
    %116 = math.log %115 : vector<1x1xf32>
    %117 = vector.broadcast %116 : vector<1x1xf32> to vector<1x128xf32>
    %118 = arith.subf %112, %117 : vector<1x128xf32>
    %119 = arith.index_cast %c5_i32 : i32 to index
    %c0_32 = arith.constant 0 : index
    %120 = vector.load %arg5[%119, %c0_32] : memref<8x128xf32, #tpu.memory_space<vmem>>, vector<1x128xf32>
    tpu.vector_store %arg5[%119, %c0_32], %118 {strides = array<i32>} : memref<8x128xf32, #tpu.memory_space<vmem>>, vector<1x128xf32>,
    %121 = arith.cmpi slt, %c5_i32, %0 : i32
    %122 = arith.select %121, %107, %102 : vector<1x128xf32>
    %c6_i32 = arith.constant 6 : i32
    %cst_33 = arith.constant dense<0.000000e+00> : vector<1x256xf32>
    %123 = tpu.matmul %122, %1, %cst_33 {dimension_numbers = #tpu.dot_dimension_numbers<[1], [0], [0], [1], [0, 0, 1, 1], [], []>} : vector<1x128xf32>, vector<128x256xf32>, vector<1x256xf32> -> vector<1x256xf32>
    %124 = arith.index_cast %c6_i32 : i32 to index
    %c0_34 = arith.constant 0 : index
    %125 = vector.load %arg2[%124, %c0_34] : memref<8x256xf32, #tpu.memory_space<vmem>>, vector<1x256xf32>
    %126 = arith.addf %123, %125 : vector<1x256xf32>
    %127 = vector.extract_strided_slice %126 {offsets = [0, 0], sizes = [1, 128], strides = [1, 1]} : vector<1x256xf32> to vector<1x128xf32>
    %128 = vector.extract_strided_slice %126 {offsets = [0, 128], sizes = [1, 128], strides = [1, 1]} : vector<1x256xf32> to vector<1x128xf32>
    %cst_35 = arith.constant dense<0xFF800000> : vector<1xf32>
    %129 = vector.multi_reduction <maximumf>, %128, %cst_35 [1] : vector<1x128xf32> to vector<1xf32>
    %130 = vector.shape_cast %129 : vector<1xf32> to vector<1x1xf32>
    %131 = vector.broadcast %130 : vector<1x1xf32> to vector<1x128xf32>
    %132 = arith.subf %128, %131 : vector<1x128xf32>
    %133 = math.exp %132 : vector<1x128xf32>
    %cst_36 = arith.constant dense<0.000000e+00> : vector<1xf32>
    %134 = vector.multi_reduction <add>, %133, %cst_36 [1] : vector<1x128xf32> to vector<1xf32>
    %135 = vector.shape_cast %134 : vector<1xf32> to vector<1x1xf32>
    %136 = math.log %135 : vector<1x1xf32>
    %137 = vector.broadcast %136 : vector<1x1xf32> to vector<1x128xf32>
    %138 = arith.subf %132, %137 : vector<1x128xf32>
    %139 = arith.index_cast %c6_i32 : i32 to index
    %c0_37 = arith.constant 0 : index
    %140 = vector.load %arg5[%139, %c0_37] : memref<8x128xf32, #tpu.memory_space<vmem>>, vector<1x128xf32>
    tpu.vector_store %arg5[%139, %c0_37], %138 {strides = array<i32>} : memref<8x128xf32, #tpu.memory_space<vmem>>, vector<1x128xf32>,
    %141 = arith.cmpi slt, %c6_i32, %0 : i32
    %142 = arith.select %141, %127, %122 : vector<1x128xf32>
    %c7_i32 = arith.constant 7 : i32
    %cst_38 = arith.constant dense<0.000000e+00> : vector<1x256xf32>
    %143 = tpu.matmul %142, %1, %cst_38 {dimension_numbers = #tpu.dot_dimension_numbers<[1], [0], [0], [1], [0, 0, 1, 1], [], []>} : vector<1x128xf32>, vector<128x256xf32>, vector<1x256xf32> -> vector<1x256xf32>
    %144 = arith.index_cast %c7_i32 : i32 to index
    %c0_39 = arith.constant 0 : index
    %145 = vector.load %arg2[%144, %c0_39] : memref<8x256xf32, #tpu.memory_space<vmem>>, vector<1x256xf32>
    %146 = arith.addf %143, %145 : vector<1x256xf32>
    %147 = vector.extract_strided_slice %146 {offsets = [0, 0], sizes = [1, 128], strides = [1, 1]} : vector<1x256xf32> to vector<1x128xf32>
    %148 = vector.extract_strided_slice %146 {offsets = [0, 128], sizes = [1, 128], strides = [1, 1]} : vector<1x256xf32> to vector<1x128xf32>
    %cst_40 = arith.constant dense<0xFF800000> : vector<1xf32>
    %149 = vector.multi_reduction <maximumf>, %148, %cst_40 [1] : vector<1x128xf32> to vector<1xf32>
    %150 = vector.shape_cast %149 : vector<1xf32> to vector<1x1xf32>
    %151 = vector.broadcast %150 : vector<1x1xf32> to vector<1x128xf32>
    %152 = arith.subf %148, %151 : vector<1x128xf32>
    %153 = math.exp %152 : vector<1x128xf32>
    %cst_41 = arith.constant dense<0.000000e+00> : vector<1xf32>
    %154 = vector.multi_reduction <add>, %153, %cst_41 [1] : vector<1x128xf32> to vector<1xf32>
    %155 = vector.shape_cast %154 : vector<1xf32> to vector<1x1xf32>
    %156 = math.log %155 : vector<1x1xf32>
    %157 = vector.broadcast %156 : vector<1x1xf32> to vector<1x128xf32>
    %158 = arith.subf %152, %157 : vector<1x128xf32>
    %159 = arith.index_cast %c7_i32 : i32 to index
    %c0_42 = arith.constant 0 : index
    %160 = vector.load %arg5[%159, %c0_42] : memref<8x128xf32, #tpu.memory_space<vmem>>, vector<1x128xf32>
    tpu.vector_store %arg5[%159, %c0_42], %158 {strides = array<i32>} : memref<8x128xf32, #tpu.memory_space<vmem>>, vector<1x128xf32>,
    %161 = arith.cmpi slt, %c7_i32, %0 : i32
    %162 = arith.select %161, %147, %142 : vector<1x128xf32>
    %c8_i32 = arith.constant 8 : i32
    %c0_43 = arith.constant 0 : index
    %c0_44 = arith.constant 0 : index
    %163 = vector.load %arg6[%c0_43, %c0_44] : memref<1x128xf32, #tpu.memory_space<vmem>>, vector<1x128xf32>
    tpu.vector_store %arg6[%c0_43, %c0_44], %162 {strides = array<i32>} : memref<1x128xf32, #tpu.memory_space<vmem>>, vector<1x128xf32>,
    return
  }
  func.func @transform_0(%arg0: i32, %arg1: memref<1xi32, #tpu.memory_space<smem>>) -> (i32, i32) {
    %c0_i32 = arith.constant 0 : i32
    %c0_i32_0 = arith.constant 0 : i32
    %c0_i32_1 = arith.constant 0 : i32
    return %c0_i32, %c0_i32_0 : i32, i32
  }
  func.func @transform_1(%arg0: i32, %arg1: memref<1xi32, #tpu.memory_space<smem>>) -> (i32, i32) {
    %c0_i32 = arith.constant 0 : i32
    %c0_i32_0 = arith.constant 0 : i32
    %c0_i32_1 = arith.constant 0 : i32
    return %c0_i32, %c0_i32_0 : i32, i32
  }
  func.func @transform_2(%arg0: i32, %arg1: memref<1xi32, #tpu.memory_space<smem>>) -> (i32, i32) {
    %c0_i32 = arith.constant 0 : i32
    %c0_i32_0 = arith.constant 0 : i32
    %c0_i32_1 = arith.constant 0 : i32
    return %c0_i32, %c0_i32_0 : i32, i32
  }
  func.func @transform_3(%arg0: i32, %arg1: memref<1xi32, #tpu.memory_space<smem>>) -> (i32, i32) {
    %c0_i32 = arith.constant 0 : i32
    %c0_i32_0 = arith.constant 0 : i32
    %c0_i32_1 = arith.constant 0 : i32
    return %c0_i32, %c0_i32_0 : i32, i32
  }
  func.func @transform_4(%arg0: i32, %arg1: memref<1xi32, #tpu.memory_space<smem>>) -> (i32, i32) {
    %c0_i32 = arith.constant 0 : i32
    %c0_i32_0 = arith.constant 0 : i32
    %c0_i32_1 = arith.constant 0 : i32
    return %c0_i32, %c0_i32_0 : i32, i32
  }
}

</mosaic_0001>

<bundles_post_ra>
// kernel: tpu_custom_call.1
= control target key start
LH: loop header
LB: loop body
LE: loop exit
PB: predicated region body
PF: predicated region fallthrough
CT: control target
= control target key end

     0   :  { %12 = vsyncpa [#allocation5], 0  ;;  %s1665_s0 = inlined_call_operand.<no memory space> [shape: s32[1], index: 0, kind: input, shape index: {}]   ;;  %s1666_s1 = inlined_call_operand.hbm [shape: f32[8,256], index: 1, kind: input, shape index: {}]   ;;  %s1667_s2 = inlined_call_operand.hbm [shape: f32[128,256], index: 2, kind: input, shape index: {}]   ;;  %s1668_s3 = inlined_call_operand.vmem [shape: f32[1,128], index: 3, kind: input, shape index: {}]   ;;  %s1669_s4 = inlined_call_operand.hbm [shape: f32[8,128], index: 4, kind: output, shape index: {0}]   ;;  %s1670_s5 = inlined_call_operand.hbm [shape: f32[1,128], index: 5, kind: output, shape index: {1}]  }
   0x1   :  { %13 = vsyncpa [#allocation8], 0 }
   0x2   :  { %14 = vsyncpa [#allocation6], 0 }
   0x3   :  { %15 = vsyncpa [#allocation11], 0  ;;  %s1318_s18 = smov [#allocation4]   ;;  %s1319_s20 = smov [#allocation7]  }
   0x4   :  { %s22_s19 = sshll.u32 %s1318_s18, 4  ;;  %s31_s21 = sshll.u32 %s1319_s20, 4  ;;  %s23_s19 = int_to_ptr.vmem [resolvable:$true] %s22_s19  ;;  %s1355_s21 = int_to_ptr.vmem [resolvable:$true] %s31_s21 }
   0x5   :  { %s1222_s24 = scalar_lea.hbm %s1666_s1, 256 }
   0x6   :  { %p1223_p0 = scmp.ne.s32.totalorder %s1666_s1, %s1222_s24  ;;  %p1226_p1 = scmp.lt.u32.totalorder %s1222_s24, %s1666_s1 }
   0x8   :  { %p1228_p2 = pnand %p1226_p1, %p1223_p0 }
   0xa   :  { %1231 = shalt.err (!%p1228_p2)
}
   0xb   :  { %s1232_s29 = scalar_lea.vmem %s23_s19, 256  ;;  %p1237_p4 = scmp.lt.s32.totalorder %s23_s19, %s23_s19 }
   0xc   :  { %p1233_p3 = scmp.ne.s32.totalorder %s23_s19, %s1232_s29  ;;  %p1238_p5 = scmp.lt.s32.totalorder %s1232_s29, %s1232_s29 }
   0xe   :  { %p1239_p6 = por %p1238_p5, %p1237_p4 }
  0x10   :  { %p1240_p7 = pnand %p1239_p6, %p1233_p3 }
  0x12   :  { %1243 = shalt.err (!%p1240_p7)
}
  0x13   :  { %25 = dma.hbm_to_vmem [thread:$0]  %s1666_s1, 256, %s23_s19, [#allocation5]  }
  0x14   :  { %s1244_s9 = scalar_lea.hbm %s1667_s2, 4096 }
  0x15   :  { %p1245_p8 = scmp.ne.s32.totalorder %s1667_s2, %s1244_s9  ;;  %p1248_p9 = scmp.lt.u32.totalorder %s1244_s9, %s1667_s2 }
  0x17   :  { %p1250_p10 = pnand %p1248_p9, %p1245_p8 }
  0x19   :  { %1253 = shalt.err (!%p1250_p10)
}
  0x1a   :  { %s1254_s14 = scalar_lea.vmem %s1355_s21, 4096  ;;  %p1259_p12 = scmp.lt.s32.totalorder %s1355_s21, %s1355_s21 }
  0x1b   :  { %p1255_p11 = scmp.ne.s32.totalorder %s1355_s21, %s1254_s14  ;;  %p1260_p13 = scmp.lt.s32.totalorder %s1254_s14, %s1254_s14 }
  0x1d   :  { %p1261_p0 = por %p1260_p13, %p1259_p12 }
  0x1f   :  { %p1262_p1 = pnand %p1261_p0, %p1255_p11 }
  0x21   :  { %1265 = shalt.err (!%p1262_p1)
}
  0x22   :  { %s1320_s1 = smov 256   ;;  %s1321_s15 = smov 16  }
  0x23   :  { %37 = dma.hbm_to_vmem [thread:$0]  %s1667_s2, 4096, %s1355_s21, [#allocation8], %s1320_s1, %s1320_s1, %s1321_s15  }
  0x24   :  { %1310 = dma.done.wait [#allocation5], 256  }
  0x25   :  { %1311 = vsyncadd [#allocation5], 4294967040 }
  0x26   :  { %1312 = dma.done.wait [#allocation8], 4096  }
  0x27   :  { %1313 = vsyncadd [#allocation8], 4294963200  ;;  %v1322_v0 = vmov 0.0   ;;  %v48_v1 = vld [vmem:[#allocation7 + $0x8] sm:$0xff]  ;;  %v50_v2 = vld [vmem:[#allocation7 + $0x18] sm:$0xff]  ;;  %v82_v50 = vlaneseq  ;;  %p177_p2 = scmp.gt.s32.totalorder %s1665_s0, 0 }
  0x28   :  { %156 = vmatprep.mubr.f32.mxu0 %v1322_v0  ;;  %259 = vmatprep.mubr.f32.mxu1 %v1322_v0  ;;  %v47_v3 = vld [vmem:[#allocation7] sm:$0xff]  ;;  %v1388_v4 = vpack.c.bf16 %v50_v2, %v48_v1  ;;  %v49_v5 = vld [vmem:[#allocation7 + $0x10] sm:$0xff]  ;;  %v52_v6 = vld [vmem:[#allocation7 + $0x28] sm:$0xff]  ;;  %vm163_vm1 = vcmask 1040384   ;;  %p279_p3 = scmp.gt.s32.totalorder %s1665_s0, 1  ;;  %p381_p4 = scmp.gt.s32.totalorder %s1665_s0, 2 }
  0x29   :  { %v54_v7 = vld [vmem:[#allocation7 + $0x38] sm:$0xff]  ;;  %v1390_v8 = vpack.c.bf16 %v49_v5, %v47_v3  ;;  %v51_v10 = vld [vmem:[#allocation7 + $0x20] sm:$0xff]  ;;  %v53_v11 = vld [vmem:[#allocation7 + $0x30] sm:$0xff]  ;;  %v83_v51 = vshrl.u32 %v82_v50, 7  ;;  %s178_s20 = scalar_select %p177_p2, 1, 0 }
  0x2a   :  { %v1392_v9 = vpack.c.bf16 %v54_v7, %v52_v6  ;;  %v56_v12 = vld [vmem:[#allocation7 + $0x48] sm:$0xff]  ;;  %928 = vmatprep.subr.bf16.mxu0 %v1388_v4  ;;  %v58_v13 = vld [vmem:[#allocation7 + $0x58] sm:$0xff]  ;;  %960 = vmatprep.subr.bf16.mxu1 %v1388_v4  ;;  %v1397_v14 = vpack.c.bf16 %v53_v11, %v51_v10  ;;  %v55_v16 = vld [vmem:[#allocation7 + $0x40] sm:$0xff]  ;;  %s280_s23 = scalar_select %p279_p3, 1, 0 }
  0x2b   :  { %930 = vmatpush1.bf16.msra.mxu0 %v1390_v8  ;;  %962 = vmatpush1.bf16.msra.mxu1 %v1390_v8  ;;  %v1401_v15 = vpack.c.bf16 %v58_v13, %v56_v12  ;;  %v57_v17 = vld [vmem:[#allocation7 + $0x50] sm:$0xff]  ;;  %v60_v18 = vld [vmem:[#allocation7 + $0x68] sm:$0xff]  ;;  %v62_v19 = vld [vmem:[#allocation7 + $0x78] sm:$0xff]  ;;  %v1477_v52 = vsub.s32 0, %v83_v51  ;;  %v1479_v54 = vsub.s32 1, %v83_v51  ;;  %v179_v56 = vstv %s178_s20  ;;  %p483_p5 = scmp.gt.s32.totalorder %s1665_s0, 3 }
  0x2c   :  { %932 = vmatprep.subr.bf16.mxu0 %v1392_v9  ;;  %964 = vmatprep.subr.bf16.mxu1 %v1392_v9  ;;  %v1405_v20 = vpack.c.bf16 %v57_v17, %v55_v16  ;;  %v1409_v21 = vpack.c.bf16 %v62_v19, %v60_v18  ;;  %v59_v22 = vld [vmem:[#allocation7 + $0x60] sm:$0xff]  ;;  %v61_v23 = vld [vmem:[#allocation7 + $0x70] sm:$0xff]  ;;  %v64_v24 = vld [vmem:[#allocation7 + $0x88] sm:$0xff]  ;;  %vm180_vm0 = vcmp.eq.s32.totalorder %v179_v56, 1  ;;  %v281_v3 = vstv %s280_s23  ;;  %s382_s26 = scalar_select %p381_p4, 1, 0 }
  0x2d   :  { %v66_v25 = vld [vmem:[#allocation7 + $0x98] sm:$0xff]  ;;  %v1413_v26 = vpack.c.bf16 %v61_v23, %v59_v22  ;;  %v63_v28 = vld [vmem:[#allocation7 + $0x80] sm:$0xff]  ;;  %v65_v29 = vld [vmem:[#allocation7 + $0x90] sm:$0xff]  ;;  %vm282_vm2 = vcmp.eq.s32.totalorder %v281_v3, 1  ;;  %s484_s29 = scalar_select %p483_p5, 1, 0 }
  0x2e   :  { %v1417_v27 = vpack.c.bf16 %v66_v25, %v64_v24  ;;  %v68_v30 = vld [vmem:[#allocation7 + $0xa8] sm:$0xff]  ;;  %v70_v31 = vld [vmem:[#allocation7 + $0xb8] sm:$0xff]  ;;  %v1421_v32 = vpack.c.bf16 %v65_v29, %v63_v28  ;;  %v67_v34 = vld [vmem:[#allocation7 + $0xa0] sm:$0xff]  ;;  %v383_v18 = vstv %s382_s26  ;;  %p585_p6 = scmp.gt.s32.totalorder %s1665_s0, 4  ;;  %p687_p7 = scmp.gt.s32.totalorder %s1665_s0, 5 }
  0x2f   :  { %934 = vmatpush1.bf16.msra.mxu0 %v1397_v14  ;;  %966 = vmatpush1.bf16.msra.mxu1 %v1397_v14  ;;  %v1425_v33 = vpack.c.bf16 %v70_v31, %v68_v30  ;;  %v69_v35 = vld [vmem:[#allocation7 + $0xb0] sm:$0xff]  ;;  %v72_v36 = vld [vmem:[#allocation7 + $0xc8] sm:$0xff]  ;;  %v74_v37 = vld [vmem:[#allocation7 + $0xd8] sm:$0xff]  ;;  %vm384_vm3 = vcmp.eq.s32.totalorder %v383_v18, 1  ;;  %p789_p8 = scmp.gt.s32.totalorder %s1665_s0, 6  ;;  %p891_p9 = scmp.gt.s32.totalorder %s1665_s0, 7 }
  0x30   :  { %936 = vmatprep.subr.bf16.mxu0 %v1401_v15  ;;  %968 = vmatprep.subr.bf16.mxu1 %v1401_v15  ;;  %v1429_v38 = vpack.c.bf16 %v69_v35, %v67_v34  ;;  %v1433_v39 = vpack.c.bf16 %v74_v37, %v72_v36  ;;  %v71_v40 = vld [vmem:[#allocation7 + $0xc0] sm:$0xff]  ;;  %v73_v41 = vld [vmem:[#allocation7 + $0xd0] sm:$0xff]  ;;  %v76_v42 = vld [vmem:[#allocation7 + $0xe8] sm:$0xff]  ;;  %v485_v34 = vstv %s484_s29  ;;  %s586_s7 = scalar_select %p585_p6, 1, 0 }
  0x31   :  { %v78_v43 = vld [vmem:[#allocation7 + $0xf8] sm:$0xff]  ;;  %v1437_v44 = vpack.c.bf16 %v73_v41, %v71_v40  ;;  %v75_v46 = vld [vmem:[#allocation7 + $0xe0] sm:$0xff]  ;;  %v77_v47 = vld [vmem:[#allocation7 + $0xf0] sm:$0xff]  ;;  %vm486_vm4 = vcmp.eq.s32.totalorder %v485_v34, 1  ;;  %s688_s10 = scalar_select %p687_p7, 1, 0 }
  0x32   :  { %v1441_v45 = vpack.c.bf16 %v78_v43, %v76_v42  ;;  %v1445_v48 = vpack.c.bf16 %v77_v47, %v75_v46  ;;  %v79_v49 = vld [vmem:[%s1668_s3] sm:$0x1]  ;;  %v183_v1 = vld [vmem:[#allocation4 + $0x1] ss:$8 sm:$0x3]  ;;  %v587_v47 = vstv %s586_s7  ;;  %s1323_s0 = smov [#allocation10]  }
  0x33   :  { %938 = vmatpush1.bf16.msra.mxu0 %v1405_v20  ;;  %970 = vmatpush1.bf16.msra.mxu1 %v1405_v20  ;;  %v80_v53 = vld [vmem:[#allocation4] ss:$8 sm:$0x3]  ;;  %v188_v2 = vrot.slane %v183_v1, %v1477_v52  ;;  %v192_v5 = vrot.slane %v183_v1, %v1479_v54  ;;  %v285_v16 = vld [vmem:[#allocation4 + $0x2] ss:$8 sm:$0x3] }
  0x34   :  { %940 = vmatprep.subr.bf16.mxu0 %v1409_v21  ;;  %972 = vmatprep.subr.bf16.mxu1 %v1409_v21  ;;  %v85_v55 = vrot.slane %v80_v53, %v1477_v52  ;;  %v89_v57 = vrot.slane %v80_v53, %v1479_v54  ;;  %v290_v17 = vrot.slane %v285_v16, %v1477_v52  ;;  %v387_v30 = vld [vmem:[#allocation4 + $0x3] ss:$8 sm:$0x3]  ;;  %v489_v43 = vld [vmem:[#allocation4 + $0x4] ss:$8 sm:$0x3] }
  0x35   :  { %v294_v19 = vrot.slane %v285_v16, %v1479_v54  ;;  %v392_v31 = vrot.slane %v387_v30, %v1477_v52  ;;  %v396_v35 = vrot.slane %v387_v30, %v1479_v54  ;;  %v494_v46 = vrot.slane %v489_v43, %v1477_v52  ;;  %s790_s13 = scalar_select %p789_p8, 1, 0 }
  0x36   :  { %vm588_vm5 = vcmp.eq.s32.totalorder %v587_v47, 1  ;;  %s892_s15 = scalar_select %p891_p9, 1, 0 }
  0x37   :  { %942 = vmatpush1.bf16.msra.mxu0 %v1413_v26  ;;  %974 = vmatpush1.bf16.msra.mxu1 %v1413_v26  ;;  %v791_v1 = vstv %s790_s13  ;;  %s913_s16 = sshll.u32 %s1323_s0, 4  ;;  %s914_s16 = int_to_ptr.vmem [resolvable:$true] %s913_s16 }
  0x38   :  { %944 = vmatprep.subr.bf16.mxu0 %v1417_v27  ;;  %976 = vmatprep.subr.bf16.mxu1 %v1417_v27  ;;  %vm792_vm7 = vcmp.eq.s32.totalorder %v791_v1, 1  ;;  %s1266_s17 = scalar_lea.vmem %s914_s16, 16  ;;  %s1270_s2 = scalar_lea.vmem %s914_s16, 32 }
  0x39   :  { %p1267_p10 = scmp.ne.s32.totalorder %s914_s16, %s1266_s17  ;;  %p1271_p11 = scmp.lt.s32.totalorder %s914_s16, %s914_s16 }
  0x3a   :  { %p1272_p12 = scmp.lt.s32.totalorder %s1270_s2, %s1266_s17 }
  0x3b   :  { %946 = vmatpush1.bf16.msra.mxu0 %v1421_v32  ;;  %978 = vmatpush1.bf16.msra.mxu1 %v1421_v32 }
  0x3c   :  { %948 = vmatprep.subr.bf16.mxu0 %v1425_v33  ;;  %980 = vmatprep.subr.bf16.mxu1 %v1425_v33  ;;  %p1273_p13 = por %p1272_p12, %p1271_p11 }
  0x3e   :  { %p1274_p0 = pnand %p1273_p13, %p1267_p10 }
  0x3f   :  { %950 = vmatpush1.bf16.msra.mxu0 %v1429_v38  ;;  %982 = vmatpush1.bf16.msra.mxu1 %v1429_v38 }
  0x40   :  { %952 = vmatprep.subr.bf16.mxu0 %v1433_v39  ;;  %984 = vmatprep.subr.bf16.mxu1 %v1433_v39 }
  0x43   :  { %954 = vmatpush1.bf16.msra.mxu0 %v1437_v44  ;;  %986 = vmatpush1.bf16.msra.mxu1 %v1437_v44 }
  0x44   :  { %956 = vmatprep.subr.bf16.mxu0 %v1441_v45  ;;  %988 = vmatprep.subr.bf16.mxu1 %v1441_v45 }
  0x47   :  { %958 = vmatpush1.bf16.msra.mxu0 %v1445_v48  ;;  %990 = vmatpush1.bf16.msra.mxu1 %v1445_v48 }
  0x48   :  { %992 = vmatprep.subr.bf16.mxu0 %v1388_v4  ;;  %1024 = vmatprep.subr.bf16.mxu1 %v1388_v4 }
  0x4a   :  { %157 = vmatmul.mubr.f32.vlgmr.msra.gmra.mrb[0].mxu0 %v79_v49 }
  0x4b   :  { %994 = vmatpush1.bf16.msra.mxu0 %v1390_v8  ;;  %361 = vmatprep.mubr.f32.mxu0 %v1322_v0 }
  0x4c   :  { %996 = vmatprep.subr.bf16.mxu0 %v1392_v9 }
  0x4f   :  { %998 = vmatpush1.bf16.msra.mxu0 %v1397_v14 }
  0x50   :  { %1000 = vmatprep.subr.bf16.mxu0 %v1401_v15 }
  0x53   :  { %1002 = vmatpush1.bf16.msra.mxu0 %v1405_v20 }
  0x54   :  { %1004 = vmatprep.subr.bf16.mxu0 %v1409_v21 }
  0x57   :  { %1006 = vmatpush1.bf16.msra.mxu0 %v1413_v26 }
  0x58   :  { %1008 = vmatprep.subr.bf16.mxu0 %v1417_v27 }
  0x5b   :  { %1010 = vmatpush1.bf16.msra.mxu0 %v1421_v32 }
  0x5c   :  { %1012 = vmatprep.subr.bf16.mxu0 %v1425_v33 }
  0x5f   :  { %1014 = vmatpush1.bf16.msra.mxu0 %v1429_v38 }
  0x60   :  { %1016 = vmatprep.subr.bf16.mxu0 %v1433_v39 }
  0x63   :  { %1018 = vmatpush1.bf16.msra.mxu0 %v1437_v44 }
  0x64   :  { %1020 = vmatprep.subr.bf16.mxu0 %v1441_v45 }
  0x67   :  { %1022 = vmatpush1.bf16.msra.mxu0 %v1445_v48 }
  0x68   :  { %1056 = vmatprep.subr.bf16.mxu0 %v1388_v4 }
 0x11d   :  { %v158_v58 = vpop.f32.mrb[0].mxu0 }
 0x11e   :  { %v159_v59 = vadd.f32 %v158_v58, %v85_v55  ;;  %v160_v60 = vpop.f32.mrb[1].mxu0 }
 0x11f   :  { %v1483_v61 = vadd.f32 %v160_v60, %v89_v57 }
 0x120   :  { %v181_v62 = vsel %vm180_vm0, %v159_v59, %v79_v49  ;;  %v498_v49 = vrot.slane %v489_v43, %v1479_v54  ;;  %v693_v59 = vld [vmem:[#allocation4 + $0x6] ss:$8 sm:$0x3] }
 0x121   :  { %260 = vmatmul.mubr.f32.vlgmr.msra.gmra.mrb[0].mxu1 %v181_v62  ;;  %v164_v63 = vsel %vm163_vm1, %v1483_v61, -inf }
 0x122   :  { %165 = vmax.xlane.f32.xlu0 %v164_v63  ;;  %1026 = vmatpush1.bf16.msra.mxu1 %v1390_v8  ;;  %v698_v63 = vrot.slane %v693_v59, %v1477_v52 }
 0x123   :  { %1028 = vmatprep.subr.bf16.mxu1 %v1392_v9  ;;  %463 = vmatprep.mubr.f32.mxu1 %v1322_v0 }
 0x126   :  { %1030 = vmatpush1.bf16.msra.mxu1 %v1397_v14 }
 0x127   :  { %1032 = vmatprep.subr.bf16.mxu1 %v1401_v15 }
 0x12a   :  { %1034 = vmatpush1.bf16.msra.mxu1 %v1405_v20 }
 0x12b   :  { %1036 = vmatprep.subr.bf16.mxu1 %v1409_v21 }
 0x12e   :  { %1038 = vmatpush1.bf16.msra.mxu1 %v1413_v26 }
 0x12f   :  { %1040 = vmatprep.subr.bf16.mxu1 %v1417_v27 }
 0x132   :  { %1042 = vmatpush1.bf16.msra.mxu1 %v1421_v32 }
 0x133   :  { %1044 = vmatprep.subr.bf16.mxu1 %v1425_v33 }
 0x136   :  { %1046 = vmatpush1.bf16.msra.mxu1 %v1429_v38 }
 0x137   :  { %1048 = vmatprep.subr.bf16.mxu1 %v1433_v39 }
 0x13a   :  { %1050 = vmatpush1.bf16.msra.mxu1 %v1437_v44 }
 0x13b   :  { %1052 = vmatprep.subr.bf16.mxu1 %v1441_v45 }
 0x13e   :  { %1054 = vmatpush1.bf16.msra.mxu1 %v1445_v48 }
 0x13f   :  { %1088 = vmatprep.subr.bf16.mxu1 %v1388_v4 }
 0x1f4   :  { %v261_v6 = vpop.f32.mrb[0].mxu1 }
 0x1f5   :  { %v262_v7 = vadd.f32 %v261_v6, %v188_v2  ;;  %v263_v10 = vpop.f32.mrb[1].mxu1 }
 0x1f6   :  { %v1509_v11 = vadd.f32 %v263_v10, %v192_v5 }
 0x1f7   :  { %v283_v12 = vsel %vm282_vm2, %v262_v7, %v181_v62 }
 0x1f8   :  { %362 = vmatmul.mubr.f32.vlgmr.msra.gmra.mrb[2].mxu0 %v283_v12  ;;  %v266_v13 = vsel %vm163_vm1, %v1509_v11, -inf }
 0x1f9   :  { %267 = vmax.xlane.f32.xlu0 %v266_v13  ;;  %1058 = vmatpush1.bf16.msra.mxu0 %v1390_v8 }
 0x1fa   :  { %1060 = vmatprep.subr.bf16.mxu0 %v1392_v9  ;;  %565 = vmatprep.mubr.f32.mxu0 %v1322_v0 }
 0x1fd   :  { %1062 = vmatpush1.bf16.msra.mxu0 %v1397_v14 }
 0x1fe   :  { %1064 = vmatprep.subr.bf16.mxu0 %v1401_v15 }
 0x201   :  { %1066 = vmatpush1.bf16.msra.mxu0 %v1405_v20 }
 0x202   :  { %1068 = vmatprep.subr.bf16.mxu0 %v1409_v21 }
 0x205   :  { %1070 = vmatpush1.bf16.msra.mxu0 %v1413_v26 }
 0x206   :  { %1072 = vmatprep.subr.bf16.mxu0 %v1417_v27 }
 0x209   :  { %1074 = vmatpush1.bf16.msra.mxu0 %v1421_v32 }
 0x20a   :  { %1076 = vmatprep.subr.bf16.mxu0 %v1425_v33 }
 0x20d   :  { %1078 = vmatpush1.bf16.msra.mxu0 %v1429_v38 }
 0x20e   :  { %1080 = vmatprep.subr.bf16.mxu0 %v1433_v39 }
 0x211   :  { %1082 = vmatpush1.bf16.msra.mxu0 %v1437_v44 }
 0x212   :  { %1084 = vmatprep.subr.bf16.mxu0 %v1441_v45 }
 0x215   :  { %1086 = vmatpush1.bf16.msra.mxu0 %v1445_v48 }
 0x216   :  { %1120 = vmatprep.subr.bf16.mxu0 %v1388_v4 }
 0x2cb   :  { %v363_v22 = vpop.f32.mrb[2].mxu0 }
 0x2cc   :  { %v364_v23 = vadd.f32 %v363_v22, %v290_v17  ;;  %v365_v24 = vpop.f32.mrb[3].mxu0 }
 0x2cd   :  { %v1535_v25 = vadd.f32 %v365_v24, %v294_v19 }
 0x2ce   :  { %v385_v28 = vsel %vm384_vm3, %v364_v23, %v283_v12 }
 0x2cf   :  { %464 = vmatmul.mubr.f32.vlgmr.msra.gmra.mrb[2].mxu1 %v385_v28  ;;  %v368_v29 = vsel %vm163_vm1, %v1535_v25, -inf }
 0x2d0   :  { %369 = vmax.xlane.f32.xlu1 %v368_v29  ;;  %1090 = vmatpush1.bf16.msra.mxu1 %v1390_v8 }
 0x2d1   :  { %1092 = vmatprep.subr.bf16.mxu1 %v1392_v9  ;;  %667 = vmatprep.mubr.f32.mxu1 %v1322_v0 }
 0x2d4   :  { %1094 = vmatpush1.bf16.msra.mxu1 %v1397_v14 }
 0x2d5   :  { %1096 = vmatprep.subr.bf16.mxu1 %v1401_v15 }
 0x2d8   :  { %1098 = vmatpush1.bf16.msra.mxu1 %v1405_v20 }
 0x2d9   :  { %1100 = vmatprep.subr.bf16.mxu1 %v1409_v21 }
 0x2dc   :  { %1102 = vmatpush1.bf16.msra.mxu1 %v1413_v26 }
 0x2dd   :  { %1104 = vmatprep.subr.bf16.mxu1 %v1417_v27 }
 0x2e0   :  { %1106 = vmatpush1.bf16.msra.mxu1 %v1421_v32 }
 0x2e1   :  { %1108 = vmatprep.subr.bf16.mxu1 %v1425_v33 }
 0x2e4   :  { %1110 = vmatpush1.bf16.msra.mxu1 %v1429_v38 }
 0x2e5   :  { %1112 = vmatprep.subr.bf16.mxu1 %v1433_v39 }
 0x2e8   :  { %1114 = vmatpush1.bf16.msra.mxu1 %v1437_v44 }
 0x2e9   :  { %1116 = vmatprep.subr.bf16.mxu1 %v1441_v45 }
 0x2ec   :  { %1118 = vmatpush1.bf16.msra.mxu1 %v1445_v48 }
 0x2ed   :  { %1152 = vmatprep.subr.bf16.mxu1 %v1388_v4 }
 0x3a2   :  { %v465_v36 = vpop.f32.mrb[2].mxu1 }
 0x3a3   :  { %v466_v37 = vadd.f32 %v465_v36, %v392_v31  ;;  %v467_v40 = vpop.f32.mrb[3].mxu1 }
 0x3a4   :  { %v1561_v41 = vadd.f32 %v467_v40, %v396_v35 }
 0x3a5   :  { %v487_v42 = vsel %vm486_vm4, %v466_v37, %v385_v28 }
 0x3a6   :  { %566 = vmatmul.mubr.f32.vlgmr.msra.gmra.mrb[4].mxu0 %v487_v42  ;;  %v470_v4 = vsel %vm163_vm1, %v1561_v41, -inf }
 0x3a7   :  { %471 = vmax.xlane.f32.xlu1 %v470_v4  ;;  %1122 = vmatpush1.bf16.msra.mxu0 %v1390_v8 }
 0x3a8   :  { %1124 = vmatprep.subr.bf16.mxu0 %v1392_v9  ;;  %769 = vmatprep.mubr.f32.mxu0 %v1322_v0 }
 0x3ab   :  { %1126 = vmatpush1.bf16.msra.mxu0 %v1397_v14 }
 0x3ac   :  { %1128 = vmatprep.subr.bf16.mxu0 %v1401_v15 }
 0x3af   :  { %1130 = vmatpush1.bf16.msra.mxu0 %v1405_v20 }
 0x3b0   :  { %1132 = vmatprep.subr.bf16.mxu0 %v1409_v21 }
 0x3b3   :  { %1134 = vmatpush1.bf16.msra.mxu0 %v1413_v26 }
 0x3b4   :  { %1136 = vmatprep.subr.bf16.mxu0 %v1417_v27 }
 0x3b7   :  { %1138 = vmatpush1.bf16.msra.mxu0 %v1421_v32 }
 0x3b8   :  { %1140 = vmatprep.subr.bf16.mxu0 %v1425_v33 }
 0x3bb   :  { %1142 = vmatpush1.bf16.msra.mxu0 %v1429_v38 }
 0x3bc   :  { %1144 = vmatprep.subr.bf16.mxu0 %v1433_v39 }
 0x3bf   :  { %1146 = vmatpush1.bf16.msra.mxu0 %v1437_v44 }
 0x3c0   :  { %1148 = vmatprep.subr.bf16.mxu0 %v1441_v45 }
 0x3c3   :  { %1150 = vmatpush1.bf16.msra.mxu0 %v1445_v48 }
 0x479   :  { %v567_v50 = vpop.f32.mrb[4].mxu0 }
 0x47a   :  { %v568_v51 = vadd.f32 %v567_v50, %v494_v46  ;;  %v569_v53 = vpop.f32.mrb[5].mxu0 }
 0x47b   :  { %v570_v55 = vadd.f32 %v569_v53, %v498_v49 }
 0x47c   :  { %v589_v56 = vsel %vm588_vm5, %v568_v51, %v487_v42 }
 0x47d   :  { %668 = vmatmul.mubr.f32.vlgmr.msra.gmra.mrb[4].mxu1 %v589_v56  ;;  %v572_v57 = vsel %vm163_vm1, %v570_v55, -inf }
 0x47e   :  { %573 = vmax.xlane.f32.xlu0 %v572_v57  ;;  %1154 = vmatpush1.bf16.msra.mxu1 %v1390_v8 }
 0x47f   :  { %1156 = vmatprep.subr.bf16.mxu1 %v1392_v9  ;;  %871 = vmatprep.mubr.f32.mxu1 %v1322_v0  ;;  %v591_v0 = vld [vmem:[#allocation4 + $0x5] ss:$8 sm:$0x3]  ;;  %v689_v9 = vstv %s688_s10 }
 0x480   :  { %v596_v8 = vrot.slane %v591_v0, %v1477_v52  ;;  %vm690_vm6 = vcmp.eq.s32.totalorder %v689_v9, 1  ;;  %v893_v9 = vstv %s892_s15 }
 0x481   :  { %vm894_vm8 = vcmp.eq.s32.totalorder %v893_v9, 1 }
 0x482   :  { %1158 = vmatpush1.bf16.msra.mxu1 %v1397_v14  ;;  %v600_v14 = vrot.slane %v591_v0, %v1479_v54 }
 0x483   :  { %1160 = vmatprep.subr.bf16.mxu1 %v1401_v15 }
 0x486   :  { %1162 = vmatpush1.bf16.msra.mxu1 %v1405_v20 }
 0x487   :  { %1164 = vmatprep.subr.bf16.mxu1 %v1409_v21 }
 0x48a   :  { %1166 = vmatpush1.bf16.msra.mxu1 %v1413_v26 }
 0x48b   :  { %1168 = vmatprep.subr.bf16.mxu1 %v1417_v27 }
 0x48e   :  { %1170 = vmatpush1.bf16.msra.mxu1 %v1421_v32 }
 0x48f   :  { %1172 = vmatprep.subr.bf16.mxu1 %v1425_v33  ;;  %v166_v33 = vpop.xlane.xlu0 %165 }
 0x492   :  { %1174 = vmatpush1.bf16.msra.mxu1 %v1429_v38  ;;  %v167_v38 = vsub.f32 %v1483_v61, %v166_v33  ;;  %v702_v61 = vrot.slane %v693_v59, %v1479_v54 }
 0x493   :  { %1176 = vmatprep.subr.bf16.mxu1 %v1433_v39  ;;  %v268_v39 = vpop.xlane.xlu0 %267 }
 0x494   :  { %v269_v49 = vsub.f32 %v1509_v11, %v268_v39 }
 0x496   :  { %1178 = vmatpush1.bf16.msra.mxu1 %v1437_v44  ;;  %v370_v44 = vpop.xlane.xlu1 %369  ;;  %v270_v51 = vmul.f32 1.442695, %v269_v49 }
 0x497   :  { %1180 = vmatprep.subr.bf16.mxu1 %v1441_v45  ;;  %v168_v45 = vmul.f32 1.442695, %v167_v38 }
 0x499   :  { %1190 = vpow2.f32 %v168_v45 }
 0x49a   :  { %1182 = vmatpush1.bf16.msra.mxu1 %v1445_v48  ;;  %v371_v48 = vsub.f32 %v1535_v25, %v370_v44  ;;  %v472_v50 = vpop.xlane.xlu1 %471 }
 0x49b   :  { %v473_v53 = vsub.f32 %v1561_v41, %v472_v50 }
 0x49c   :  { %v372_v60 = vmul.f32 1.442695, %v371_v48 }
 0x49d   :  { %v474_v57 = vmul.f32 1.442695, %v473_v53 }
 0x49e   :  { %1192 = vpow2.f32 %v372_v60 }
 0x4a3   :  { %v1191_v13 = vpop.eup %1190 }
 0x4a4   :  { %v170_v16 = vsel %vm163_vm1, %v1191_v13, 0.0 }
 0x4a8   :  { %v1193_v17 = vpop.eup %1192 }
 0x4a9   :  { %v374_v18 = vsel %vm163_vm1, %v1193_v17, 0.0 }
 0x50b   :  { %v574_v58 = vpop.xlane.xlu0 %573 }
 0x50c   :  { %v575_v62 = vsub.f32 %v570_v55, %v574_v58 }
 0x50e   :  { %v576_v2 = vmul.f32 1.442695, %v575_v62 }
 0x510   :  { %1194 = vpow2.f32 %v576_v2 }
 0x51a   :  { %v1195_v19 = vpop.eup %1194 }
 0x51b   :  { %v578_v22 = vsel %vm163_vm1, %v1195_v19, 0.0 }
 0x550   :  { %v669_v15 = vpop.f32.mrb[4].mxu1 }
 0x551   :  { %v670_v20 = vadd.f32 %v669_v15, %v596_v8  ;;  %v671_v21 = vpop.f32.mrb[5].mxu1 }
 0x552   :  { %v1608_v26 = vadd.f32 %v671_v21, %v600_v14 }
 0x553   :  { %v691_v27 = vsel %vm690_vm6, %v670_v20, %v589_v56  ;;  %v795_v56 = vld [vmem:[#allocation4 + $0x7] ss:$8 sm:$0x3] }
 0x554   :  { %770 = vmatmul.mubr.f32.vlgmr.msra.gmra.mrb[6].mxu0 %v691_v27  ;;  %v674_v32 = vsel %vm163_vm1, %v1608_v26, -inf  ;;  %v800_v8 = vrot.slane %v795_v56, %v1477_v52  ;;  %v804_v11 = vrot.slane %v795_v56, %v1479_v54 }
 0x555   :  { %675 = vmax.xlane.f32.xlu1 %v674_v32 }
 0x5e2   :  { %v676_v55 = vpop.xlane.xlu1 %675 }
 0x5e3   :  { %v677_v0 = vsub.f32 %v1608_v26, %v676_v55 }
 0x5e5   :  { %v678_v14 = vmul.f32 1.442695, %v677_v0 }
 0x627   :  { %v771_v3 = vpop.f32.mrb[6].mxu0 }
 0x628   :  { %v772_v5 = vadd.f32 %v771_v3, %v698_v63  ;;  %v773_v6 = vpop.f32.mrb[7].mxu0 }
 0x629   :  { %v774_v7 = vadd.f32 %v773_v6, %v702_v61 }
 0x62a   :  { %v793_v10 = vsel %vm792_vm7, %v772_v5, %v691_v27 }
 0x62b   :  { %872 = vmatmul.mubr.f32.vlgmr.msra.gmra.mrb[6].mxu1 %v793_v10  ;;  %v776_v12 = vsel %vm163_vm1, %v774_v7, -inf }
 0x62c   :  { %777 = vmax.xlane.f32.xlu0 %v776_v12 }
 0x630   :  { %171 = vadd.xlane.f32.xlu0 %v170_v16 }
 0x634   :  { %375 = vadd.xlane.f32.xlu0 %v374_v18 }
 0x638   :  { %579 = vadd.xlane.f32.xlu0 %v578_v22 }
 0x6b9   :  { %v778_v23 = vpop.xlane.xlu0 %777 }
 0x6ba   :  { %v1623_v24 = vsub.f32 %v774_v7, %v778_v23 }
 0x6bc   :  { %v780_v25 = vmul.f32 1.442695, %v1623_v24 }
 0x6bd   :  { %v172_v28 = vpop.xlane.xlu0 %171 }
 0x6be   :  { %1196 = vpow2.f32 %v780_v25 }
 0x6bf   :  { %1198 = vlog2.f32 %v172_v28 }
 0x6c1   :  { %v376_v29 = vpop.xlane.xlu0 %375 }
 0x6c2   :  { %1200 = vlog2.f32 %v376_v29 }
 0x6c5   :  { %v580_v30 = vpop.xlane.xlu0 %579 }
 0x6c6   :  { %1202 = vlog2.f32 %v580_v30 }
 0x6c7   :  { %1204 = vpow2.f32 %v270_v51 }
 0x6c8   :  { %v1197_v31 = vpop.eup %1196  ;;  %1206 = vpow2.f32 %v474_v57 }
 0x6c9   :  { %v1199_v34 = vpop.eup %1198  ;;  %v782_v35 = vsel %vm163_vm1, %v1197_v31, 0.0  ;;  %1208 = vpow2.f32 %v678_v14 }
 0x6ca   :  { %v174_v36 = vmul.f32 0.6931472, %v1199_v34  ;;  %783 = vadd.xlane.f32.xlu0 %v782_v35 }
 0x6cc   :  { %v1201_v37 = vpop.eup %1200  ;;  %v175_v40 = vsub.f32 %v167_v38, %v174_v36 }
 0x6cd   :  { %v378_v42 = vmul.f32 0.6931472, %v1201_v37 }
 0x6ce   :  { %176 = vst [vmem:[#allocation9] sm:$0x1] %v175_v40 }
 0x6cf   :  { %v379_v4 = vsub.f32 %v371_v48, %v378_v42 }
 0x6d0   :  { %v1203_v43 = vpop.eup %1202 }
 0x6d1   :  { %380 = vst [vmem:[#allocation9 + $0x2] sm:$0x1] %v379_v4  ;;  %v582_v46 = vmul.f32 0.6931472, %v1203_v43  ;;  %v1205_v33 = vpop.eup %1204 }
 0x6d2   :  { %v272_v26 = vsel %vm163_vm1, %v1205_v33, 0.0  ;;  %v1207_v52 = vpop.eup %1206 }
 0x6d3   :  { %v583_v47 = vsub.f32 %v575_v62, %v582_v46  ;;  %v476_v54 = vsel %vm163_vm1, %v1207_v52, 0.0  ;;  %v1209_v38 = vpop.eup %1208 }
 0x6d4   :  { %v680_v39 = vsel %vm163_vm1, %v1209_v38, 0.0 }
 0x6d5   :  { %584 = vst [vmem:[#allocation9 + $0x4] sm:$0x1] %v583_v47 }
 0x6fe   :  { %v873_v15 = vpop.f32.mrb[6].mxu1 }
 0x6ff   :  { %v874_v20 = vadd.f32 %v873_v15, %v800_v8  ;;  %v875_v21 = vpop.f32.mrb[7].mxu1 }
 0x700   :  { %v876_v27 = vadd.f32 %v875_v21, %v804_v11 }
 0x701   :  { %v895_v41 = vsel %vm894_vm8, %v874_v20, %v793_v10 }
 0x702   :  { %v878_v32 = vsel %vm163_vm1, %v876_v27, -inf  ;;  %896 = vst [vmem:[#allocation10] sm:$0x1] %v895_v41 }
 0x703   :  { %879 = vmax.xlane.f32.xlu1 %v878_v32 }
 0x707   :  { %273 = vadd.xlane.f32.xlu1 %v272_v26 }
 0x70b   :  { %477 = vadd.xlane.f32.xlu1 %v476_v54 }
 0x70f   :  { %681 = vadd.xlane.f32.xlu1 %v680_v39 }
 0x757   :  { %v784_v44 = vpop.xlane.xlu0 %783 }
 0x758   :  { %1210 = vlog2.f32 %v784_v44 }
 0x762   :  { %v1211_v45 = vpop.eup %1210 }
 0x763   :  { %v786_v48 = vmul.f32 0.6931472, %v1211_v45 }
 0x765   :  { %v787_v58 = vsub.f32 %v1623_v24, %v786_v48 }
 0x767   :  { %788 = vst [vmem:[#allocation9 + $0x6] sm:$0x1] %v787_v58 }
 0x790   :  { %v880_v59 = vpop.xlane.xlu1 %879 }
 0x791   :  { %v881_v60 = vsub.f32 %v876_v27, %v880_v59 }
 0x793   :  { %v882_v62 = vmul.f32 1.442695, %v881_v60 }
 0x794   :  { %v274_v63 = vpop.xlane.xlu1 %273 }
 0x795   :  { %1212 = vpow2.f32 %v882_v62 }
 0x796   :  { %1214 = vlog2.f32 %v274_v63 }
 0x798   :  { %v478_v1 = vpop.xlane.xlu1 %477 }
 0x799   :  { %1216 = vlog2.f32 %v478_v1 }
 0x79c   :  { %v682_v61 = vpop.xlane.xlu1 %681 }
 0x79d   :  { %1218 = vlog2.f32 %v682_v61 }
 0x79f   :  { %v1213_v2 = vpop.eup %1212 }
 0x7a0   :  { %v1215_v3 = vpop.eup %1214  ;;  %v884_v5 = vsel %vm163_vm1, %v1213_v2, 0.0 }
 0x7a1   :  { %v276_v6 = vmul.f32 0.6931472, %v1215_v3  ;;  %885 = vadd.xlane.f32.xlu1 %v884_v5 }
 0x7a3   :  { %v1217_v7 = vpop.eup %1216  ;;  %v277_v10 = vsub.f32 %v269_v49, %v276_v6 }
 0x7a4   :  { %v480_v12 = vmul.f32 0.6931472, %v1217_v7 }
 0x7a5   :  { %278 = vst [vmem:[#allocation9 + $0x1] sm:$0x1] %v277_v10 }
 0x7a6   :  { %v481_v13 = vsub.f32 %v473_v53, %v480_v12 }
 0x7a7   :  { %v1219_v16 = vpop.eup %1218 }
 0x7a8   :  { %482 = vst [vmem:[#allocation9 + $0x3] sm:$0x1] %v481_v13  ;;  %v684_v17 = vmul.f32 0.6931472, %v1219_v16 }
 0x7aa   :  { %v685_v18 = vsub.f32 %v677_v0, %v684_v17 }
 0x7ac   :  { %686 = vst [vmem:[#allocation9 + $0x5] sm:$0x1] %v685_v18 }
 0x7ad   :  { %1277 = shalt.err (!%p1274_p0)
}
 0x7ae   :  { %s1278_s19 = scalar_lea.hbm %s1670_s5, 16 }
 0x7af   :  { %p1279_p1 = scmp.ne.s32.totalorder %s1670_s5, %s1278_s19  ;;  %p1282_p2 = scmp.lt.u32.totalorder %s1278_s19, %s1670_s5 }
 0x7b1   :  { %p1284_p3 = pnand %p1282_p2, %p1279_p1 }
 0x7b3   :  { %1287 = shalt.err (!%p1284_p3)
}
 0x7b4   :  { %916 = dma.vmem_to_hbm [thread:$0]  %s914_s16, 16, %s1670_s5, [#allocation11]  }
 0x7b5   :  { %s1324_s26 = smov [#allocation9]  }
 0x7b6   :  { %s903_s27 = sshll.u32 %s1324_s26, 4  ;;  %s904_s27 = int_to_ptr.vmem [resolvable:$true] %s903_s27 }
 0x7b7   :  { %s1288_s28 = scalar_lea.vmem %s904_s27, 128  ;;  %p1293_p5 = scmp.lt.s32.totalorder %s904_s27, %s904_s27 }
 0x7b8   :  { %p1289_p4 = scmp.ne.s32.totalorder %s904_s27, %s1288_s28  ;;  %p1294_p6 = scmp.lt.s32.totalorder %s1288_s28, %s1288_s28 }
 0x7ba   :  { %p1295_p7 = por %p1294_p6, %p1293_p5 }
 0x7bc   :  { %p1296_p8 = pnand %p1295_p7, %p1289_p4 }
 0x82e   :  { %v886_v19 = vpop.xlane.xlu1 %885 }
 0x82f   :  { %1220 = vlog2.f32 %v886_v19 }
 0x839   :  { %v1221_v22 = vpop.eup %1220 }
 0x83a   :  { %v888_v23 = vmul.f32 0.6931472, %v1221_v22 }
 0x83c   :  { %v889_v24 = vsub.f32 %v881_v60, %v888_v23 }
 0x83e   :  { %890 = vst [vmem:[#allocation9 + $0x7] sm:$0x1] %v889_v24 }
 0x83f   :  { %1299 = shalt.err (!%p1296_p8)
}
 0x840   :  { %s1300_s5 = scalar_lea.hbm %s1669_s4, 128 }
 0x841   :  { %p1301_p9 = scmp.ne.s32.totalorder %s1669_s4, %s1300_s5  ;;  %p1304_p10 = scmp.lt.u32.totalorder %s1300_s5, %s1669_s4 }
 0x843   :  { %p1306_p11 = pnand %p1304_p10, %p1301_p9 }
 0x845   :  { %1309 = shalt.err (!%p1306_p11)
}
 0x846   :  { %906 = dma.vmem_to_hbm [thread:$0]  %s904_s27, 128, %s1669_s4, [#allocation6]  }
 0x847   :  { %1314 = dma.done.wait [#allocation6], 128  }
 0x848   :  { %1315 = vsyncadd [#allocation6], 4294967168 }
 0x849   :  { %1316 = dma.done.wait [#allocation11], 16  }
 0x84a   :  { %1317 = vsyncadd [#allocation11], 4294967280 }
 0x84b   :  { %923 = vsyncpa [#allocation5], 1 }
 0x84c   :  { %924 = vsyncpa [#allocation8], 1 }
 0x84d   :  { %925 = vsyncpa [#allocation6], 1 }
 0x84e   :  { %926 = vsyncpa [#allocation11], 1 }

</bundles_post_ra>
